<compile_context>
chip_gen: v5e
topology: v5e:2x2
jax: 0.10.0
libtpu: 0.0.40
codegen_flags: <defaults>
</compile_context>

<pallas_src>
import functools
import numpy as np
import jax
import jax.numpy as jnp
from jax import lax
from jax.experimental import pallas as pl
from jax.experimental.pallas import tpu as pltpu


def _mha_kernel(qh_ref, kh_ref, vh_ref, woh_ref, bo_ref, y_ref, attn_ref,
                acc_ref, *, tq_total, bidirectional):
    """One grid step = one (batch, Tq tile, head). Computes the scaled-dot-product
    attention for that head/tile and accumulates its slice of the output
    projection into the resident f32 accumulator; writes y on the last head."""
    h = pl.program_id(2)
    num_heads = pl.num_programs(2)

    hd = qh_ref.shape[-1]
    scale = jnp.float32(1.0 / np.sqrt(hd))

    # fold the 1/sqrt(hd) scale into q (fewer elements than the score matrix)
    qh = (qh_ref[0, 0] * scale).astype(jnp.bfloat16)   # (TQ_TILE, hd)
    kh = kh_ref[0, 0].astype(jnp.bfloat16)             # (Tk, hd)
    vh = vh_ref[0, 0].astype(jnp.bfloat16)             # (Tk, hd)

    tq_tile = qh.shape[0]
    tk = kh.shape[0]

    # scores: q @ k.T on the MXU, bf16 inputs, f32 accumulation.
    s = lax.dot_general(qh, kh, (((1,), (1,)), ((), ())),
                        preferred_element_type=jnp.float32)

    if not bidirectional:
        # causal mask matching torch.tril(..., diagonal=Tk - Tq); row index is
        # global (Tq tile offset added).  NOTE: if Tk < Tq the first query rows
        # are fully masked and softmax yields NaN, exactly like the PyTorch module.
        row0 = pl.program_id(1) * tq_tile
        row = lax.broadcasted_iota(jnp.int32, (tq_tile, tk), 0) + row0
        col = lax.broadcasted_iota(jnp.int32, (tq_tile, tk), 1)
        s = jnp.where(col <= row + (tk - tq_total), s, -jnp.inf)

    # numerically stable softmax; reciprocal goes to the EUP instead of a VALU divide
    s = s - jnp.max(s, axis=-1, keepdims=True)
    e = jnp.exp(s)
    w = e * pl.reciprocal(jnp.sum(e, axis=-1, keepdims=True), approx=True)

    attn_ref[0, 0] = w.astype(attn_ref.dtype)

    # per-head attention output and its slice of the output projection,
    # accumulated into the resident f32 scratch (head axis is last, "arbitrary").
    head_out = jnp.dot(w.astype(jnp.bfloat16), vh,
                       preferred_element_type=jnp.float32)       # (TQ_TILE, hd)
    contrib = jnp.dot(head_out, woh_ref[0],
                      preferred_element_type=jnp.float32)        # (TQ_TILE, out)

    @pl.when(h == 0)
    def _():
        acc_ref[...] = contrib

    @pl.when(h > 0)
    def _():
        acc_ref[...] += contrib

    @pl.when(h == num_heads - 1)
    def _():
        y_ref[0] = (acc_ref[...] + bo_ref[...]).astype(y_ref.dtype)


def _pick_tq_tile(tq, max_tile=256):
    """Largest Tq tile <= max_tile that divides Tq and is sublane-aligned."""
    if tq <= max_tile:
        return tq
    for t in range(max_tile, 7, -8):
        if tq % t == 0:
            return t
    return tq   # no aligned divisor; fall back to a single full-length tile


def multi_head_attention(q, k, v, params, *, num_heads, bidirectional=False,
                         attn_dtype=jnp.float32):
    """q:(B,Tq,Dq), k:(B,Tk,Dk), v:(B,Tk,Dv) ->
       (y (B,Tq,output_size), attention_weights (B,H,Tq,Tk))."""
    # TODO(synk): the PyTorch forward's optional `seq_len` / `mask` arguments are
    # not implemented; only the default causal / bidirectional paths are covered.
    B, Tq, _ = q.shape
    _, Tk, _ = k.shape
    wq, bq, wk, bk, wv, bv, wo, bo = params
    d_model = wq.shape[1]
    out_size = wo.shape[1]
    if d_model % num_heads != 0:
        raise ValueError(f"d_model={d_model} not divisible by num_heads={num_heads}")
    hd = d_model // num_heads

    # Tiny-K projections as single big XLA GEMMs, reshaped head-major so each
    # head's block is contiguous for the kernel.
    qp = (q @ wq + bq).reshape(B, Tq, num_heads, hd).transpose(0, 2, 1, 3)
    kp = (k @ wk + bk).reshape(B, Tk, num_heads, hd).transpose(0, 2, 1, 3)
    vp = (v @ wv + bv).reshape(B, Tk, num_heads, hd).transpose(0, 2, 1, 3)
    wo_h = wo.reshape(num_heads, hd, out_size)
    bo2 = bo.reshape(1, out_size)

    tq_tile = _pick_tq_tile(Tq)
    n_tq = Tq // tq_tile
    grid = (B, n_tq, num_heads)

    in_specs = [
        pl.BlockSpec((1, 1, tq_tile, hd), lambda b, t, h: (b, h, t, 0)),    # q (head-major)
        pl.BlockSpec((1, 1, Tk, hd),      lambda b, t, h: (b, h, 0, 0)),    # k
        pl.BlockSpec((1, 1, Tk, hd),      lambda b, t, h: (b, h, 0, 0)),    # v
        pl.BlockSpec((1, hd, out_size),   lambda b, t, h: (h, 0, 0)),       # wo head slice
        pl.BlockSpec((1, out_size),       lambda b, t, h: (0, 0)),          # bo
    ]
    out_specs = (
        pl.BlockSpec((1, tq_tile, out_size), lambda b, t, h: (b, t, 0)),    # y (resident over h)
        pl.BlockSpec((1, 1, tq_tile, Tk),    lambda b, t, h: (b, h, t, 0)), # attention weights
    )
    out_shape = (
        jax.ShapeDtypeStruct((B, Tq, out_size), jnp.float32),
        jax.ShapeDtypeStruct((B, num_heads, Tq, Tk), attn_dtype),
    )

    # per-step block footprint (double-buffered) + headroom for temporaries
    attn_bytes = jnp.dtype(attn_dtype).itemsize
    per_step = ((tq_tile * hd + 2 * Tk * hd + hd * out_size + out_size
                 + 2 * tq_tile * out_size + 2 * tq_tile * Tk) * 4
                + tq_tile * Tk * attn_bytes)
    vmem_limit = int(min(max(6 * per_step + (4 << 20), 16 << 20), 64 << 20))

    kernel = functools.partial(
        _mha_kernel, tq_total=Tq, bidirectional=bidirectional)

    return pl.pallas_call(
        kernel,
        grid=grid,
        in_specs=in_specs,
        out_specs=out_specs,
        out_shape=out_shape,
        scratch_shapes=[pltpu.VMEM((tq_tile, out_size), jnp.float32)],
        compiler_params=pltpu.CompilerParams(
            dimension_semantics=("parallel", "parallel", "arbitrary"),
            vmem_limit_bytes=vmem_limit),
    )(qp, kp, vp, wo_h, bo2)


def reference_forward(q, k, v, params, *, num_heads, bidirectional=False):
    """Pure-JAX (f32) reference mirroring the PyTorch module."""
    wq, bq, wk, bk, wv, bv, wo, bo = params
    B, Tq, _ = q.shape
    Tk = k.shape[1]
    d_model = wq.shape[1]
    hd = d_model // num_heads

    qp = (q @ wq + bq).reshape(B, Tq, num_heads, hd).transpose(0, 2, 1, 3)
    kp = (k @ wk + bk).reshape(B, Tk, num_heads, hd).transpose(0, 2, 1, 3)
    vp = (v @ wv + bv).reshape(B, Tk, num_heads, hd).transpose(0, 2, 1, 3)

    s = jnp.einsum('bhqd,bhkd->bhqk', qp, kp) / np.sqrt(hd)
    if not bidirectional:
        row = jnp.arange(Tq)[:, None]
        col = jnp.arange(Tk)[None, :]
        causal = col <= (row + (Tk - Tq))
        s = jnp.where(causal[None, None], s, -jnp.inf)
    w = jax.nn.softmax(s, axis=-1)
    x = jnp.einsum('bhqk,bhkd->bhqd', w, vp)
    x = x.transpose(0, 2, 1, 3).reshape(B, Tq, d_model)
    return x @ wo + bo, w


def init_params(key, queue_size, key_size, value_size, d_model, output_size):
    """Deterministic PyTorch-nn.Linear-style init: U(-1/sqrt(fan_in), 1/sqrt(fan_in))."""
    keys = jax.random.split(key, 8)

    def lin(kw, kb, fan_in, fan_out):
        bound = 1.0 / np.sqrt(fan_in)
        w = jax.random.uniform(kw, (fan_in, fan_out), jnp.float32, -bound, bound)
        b = jax.random.uniform(kb, (fan_out,), jnp.float32, -bound, bound)
        return w, b

    wq, bq = lin(keys[0], keys[1], queue_size, d_model)
    wk, bk = lin(keys[2], keys[3], key_size, d_model)
    wv, bv = lin(keys[4], keys[5], value_size, d_model)
    wo, bo = lin(keys[6], keys[7], d_model, output_size)
    return (wq, bq, wk, bk, wv, bv, wo, bo)


if __name__ == "__main__":
    # small shapes consistent with MultiHeadAttention(4, 6, 8, d_model, 4, num_heads=2)
    B, Tq, Tk = 2, 8, 8
    queue_size, key_size, value_size = 4, 6, 8
    d_model, output_size, num_heads = 32, 4, 2
    bidirectional = False  # module default (causal attention)

    root = jax.random.PRNGKey(0)
    kq, kk, kv, kparam = jax.random.split(root, 4)
    q = jax.random.normal(kq, (B, Tq, queue_size), jnp.float32)
    k = jax.random.normal(kk, (B, Tk, key_size), jnp.float32)
    v = jax.random.normal(kv, (B, Tk, value_size), jnp.float32)
    params = init_params(kparam, queue_size, key_size, value_size, d_model, output_size)

    y, attn = multi_head_attention(
        q, k, v, params, num_heads=num_heads, bidirectional=bidirectional)
    y = jax.block_until_ready(y)
    attn = jax.block_until_ready(attn)

    y_ref, attn_ref = reference_forward(
        q, k, v, params, num_heads=num_heads, bidirectional=bidirectional)
    assert y.shape == (B, Tq, output_size)
    assert attn.shape == (B, num_heads, Tq, Tk)
    # tolerance relaxed vs pure-f32 reference because the kernel uses bf16 MXU
    # inputs (f32 accumulation) and an approximate EUP reciprocal in softmax.
    np.testing.assert_allclose(np.asarray(attn), np.asarray(attn_ref), atol=5e-2, rtol=5e-2)
    np.testing.assert_allclose(np.asarray(y), np.asarray(y_ref), atol=5e-2, rtol=5e-2)

    print("KERNEL_OK")
</pallas_src>

<mosaic_0001>
module attributes {stable_mosaic.version = 11 : i64} {
  func.func @_mha_kernel(%arg0: i32, %arg1: i32, %arg2: i32, %arg3: memref<1x1x8x16xf32, #tpu.memory_space<vmem>>, %arg4: memref<1x1x8x16xf32, #tpu.memory_space<vmem>>, %arg5: memref<1x1x8x16xf32, #tpu.memory_space<vmem>>, %arg6: memref<1x16x4xf32, #tpu.memory_space<vmem>>, %arg7: memref<1x4xf32, #tpu.memory_space<vmem>>, %arg8: memref<1x8x4xf32, #tpu.memory_space<vmem>>, %arg9: memref<1x1x8x8xf32, #tpu.memory_space<vmem>>, %arg10: memref<8x4xf32, #tpu.memory_space<vmem>>) attributes {dimension_semantics = [#tpu.dimension_semantics<parallel>, #tpu.dimension_semantics<parallel>, #tpu.dimension_semantics<arbitrary>], iteration_bounds = array<i64: 2, 1, 2>, scalar_prefetch = 0 : i64, scratch_operands = 1 : i64, tpu.core_type = #tpu.core_type<tc>, window_params = [{transform_indices = @transform_0, window_bounds = array<i64: 1, 1, 8, 16>}, {transform_indices = @transform_1, window_bounds = array<i64: 1, 1, 8, 16>}, {transform_indices = @transform_2, window_bounds = array<i64: 1, 1, 8, 16>}, {transform_indices = @transform_3, window_bounds = array<i64: 1, 16, 4>}, {pipeline_mode = #tpu.pipeline_mode<synchronous>, transform_indices = @transform_4, window_bounds = array<i64: 1, 4>}, {transform_indices = @transform_5, window_bounds = array<i64: 1, 8, 4>}, {transform_indices = @transform_6, window_bounds = array<i64: 1, 1, 8, 8>}]} {
    %c0 = arith.constant 0 : index
    %c0_0 = arith.constant 0 : index
    %c0_1 = arith.constant 0 : index
    %c0_2 = arith.constant 0 : index
    %0 = vector.load %arg3[%c0, %c0_0, %c0_1, %c0_2] : memref<1x1x8x16xf32, #tpu.memory_space<vmem>>, vector<1x1x8x16xf32>
    %1 = vector.shape_cast %0 : vector<1x1x8x16xf32> to vector<8x16xf32>
    %cst = arith.constant 2.500000e-01 : f32
    %2 = vector.broadcast %cst : f32 to vector<8x16xf32>
    %3 = arith.mulf %1, %2 : vector<8x16xf32>
    %4 = arith.truncf %3 : vector<8x16xf32> to vector<8x16xbf16>
    %c0_3 = arith.constant 0 : index
    %c0_4 = arith.constant 0 : index
    %c0_5 = arith.constant 0 : index
    %c0_6 = arith.constant 0 : index
    %5 = vector.load %arg4[%c0_3, %c0_4, %c0_5, %c0_6] : memref<1x1x8x16xf32, #tpu.memory_space<vmem>>, vector<1x1x8x16xf32>
    %6 = vector.shape_cast %5 : vector<1x1x8x16xf32> to vector<8x16xf32>
    %7 = arith.truncf %6 : vector<8x16xf32> to vector<8x16xbf16>
    %c0_7 = arith.constant 0 : index
    %c0_8 = arith.constant 0 : index
    %c0_9 = arith.constant 0 : index
    %c0_10 = arith.constant 0 : index
    %8 = vector.load %arg5[%c0_7, %c0_8, %c0_9, %c0_10] : memref<1x1x8x16xf32, #tpu.memory_space<vmem>>, vector<1x1x8x16xf32>
    %9 = vector.shape_cast %8 : vector<1x1x8x16xf32> to vector<8x16xf32>
    %10 = arith.truncf %9 : vector<8x16xf32> to vector<8x16xbf16>
    %cst_11 = arith.constant dense<0.000000e+00> : vector<8x8xf32>
    %11 = tpu.matmul %4, %7, %cst_11 {dimension_numbers = #tpu.dot_dimension_numbers<[1], [1], [0], [0], [0, 0, 1, 0], [], []>} : vector<8x16xbf16>, vector<8x16xbf16>, vector<8x8xf32> -> vector<8x8xf32>
    %c8_i32 = arith.constant 8 : i32
    %12 = arith.muli %arg1, %c8_i32 : i32
    %13 = tpu.iota {dimensions = array<i32: 0>} : vector<8x8xi32>
    %14 = vector.broadcast %12 : i32 to vector<8x8xi32>
    %15 = arith.addi %13, %14 : vector<8x8xi32>
    %16 = tpu.iota {dimensions = array<i32: 1>} : vector<8x8xi32>
    %c0_i32 = arith.constant 0 : i32
    %17 = vector.broadcast %c0_i32 : i32 to vector<8x8xi32>
    %18 = arith.addi %15, %17 : vector<8x8xi32>
    %19 = arith.cmpi sle, %16, %18 : vector<8x8xi32>
    %cst_12 = arith.constant 0xFF800000 : f32
    %20 = vector.broadcast %cst_12 : f32 to vector<8x8xf32>
    %21 = arith.select %19, %11, %20 : vector<8x8xi1>, vector<8x8xf32>
    %cst_13 = arith.constant dense<0xFF800000> : vector<8xf32>
    %22 = vector.multi_reduction <maximumf>, %21, %cst_13 [1] : vector<8x8xf32> to vector<8xf32>
    %23 = vector.shape_cast %22 : vector<8xf32> to vector<8x1xf32>
    %24 = vector.broadcast %23 : vector<8x1xf32> to vector<8x8xf32>
    %25 = arith.subf %21, %24 : vector<8x8xf32>
    %26 = math.exp %25 : vector<8x8xf32>
    %cst_14 = arith.constant dense<0.000000e+00> : vector<8xf32>
    %27 = vector.multi_reduction <add>, %26, %cst_14 [1] : vector<8x8xf32> to vector<8xf32>
    %28 = vector.shape_cast %27 : vector<8xf32> to vector<8x1xf32>
    %29 = tpu.reciprocal %28 {approx = true} : vector<8x1xf32> -> vector<8x1xf32>
    %30 = vector.broadcast %29 : vector<8x1xf32> to vector<8x8xf32>
    %31 = arith.mulf %26, %30 : vector<8x8xf32>
    %c0_15 = arith.constant 0 : index
    %c0_16 = arith.constant 0 : index
    %c0_17 = arith.constant 0 : index
    %c0_18 = arith.constant 0 : index
    %32 = vector.load %arg9[%c0_15, %c0_16, %c0_17, %c0_18] : memref<1x1x8x8xf32, #tpu.memory_space<vmem>>, vector<1x1x8x8xf32>
    %33 = vector.shape_cast %32 : vector<1x1x8x8xf32> to vector<8x8xf32>
    %34 = vector.shape_cast %31 : vector<8x8xf32> to vector<1x1x8x8xf32>
    tpu.vector_store %arg9[%c0_15, %c0_16, %c0_17, %c0_18], %34 {strides = array<i32>} : memref<1x1x8x8xf32, #tpu.memory_space<vmem>>, vector<1x1x8x8xf32>,
    %35 = arith.truncf %31 : vector<8x8xf32> to vector<8x8xbf16>
    %cst_19 = arith.constant dense<0.000000e+00> : vector<8x16xf32>
    %36 = tpu.matmul %35, %10, %cst_19 {dimension_numbers = #tpu.dot_dimension_numbers<[1], [0], [0], [1], [0, 0, 1, 1], [], []>} : vector<8x8xbf16>, vector<8x16xbf16>, vector<8x16xf32> -> vector<8x16xf32>
    %c0_20 = arith.constant 0 : index
    %c0_21 = arith.constant 0 : index
    %c0_22 = arith.constant 0 : index
    %37 = vector.load %arg6[%c0_20, %c0_21, %c0_22] : memref<1x16x4xf32, #tpu.memory_space<vmem>>, vector<1x16x4xf32>
    %38 = vector.shape_cast %37 : vector<1x16x4xf32> to vector<16x4xf32>
    %cst_23 = arith.constant dense<0.000000e+00> : vector<8x4xf32>
    %39 = tpu.matmul %36, %38, %cst_23 {dimension_numbers = #tpu.dot_dimension_numbers<[1], [0], [0], [1], [0, 0, 1, 1], [], []>} : vector<8x16xf32>, vector<16x4xf32>, vector<8x4xf32> -> vector<8x4xf32>
    %c0_i32_24 = arith.constant 0 : i32
    %40 = arith.cmpi eq, %arg2, %c0_i32_24 : i32
    %41 = arith.extui %40 : i1 to i32
    %c0_i32_25 = arith.constant 0 : i32
    %42 = arith.cmpi ne, %41, %c0_i32_25 : i32
    scf.if %42 {
      %c0_29 = arith.constant 0 : index
      %c0_30 = arith.constant 0 : index
      %49 = vector.load %arg10[%c0_29, %c0_30] : memref<8x4xf32, #tpu.memory_space<vmem>>, vector<8x4xf32>
      tpu.vector_store %arg10[%c0_29, %c0_30], %39 {strides = array<i32>} : memref<8x4xf32, #tpu.memory_space<vmem>>, vector<8x4xf32>,
    } else {
    }
    %c0_i32_26 = arith.constant 0 : i32
    %43 = arith.cmpi sgt, %arg2, %c0_i32_26 : i32
    %44 = arith.extui %43 : i1 to i32
    %c0_i32_27 = arith.constant 0 : i32
    %45 = arith.cmpi ne, %44, %c0_i32_27 : i32
    scf.if %45 {
      %c0_29 = arith.constant 0 : index
      %c0_30 = arith.constant 0 : index
      %49 = vector.load %arg10[%c0_29, %c0_30] : memref<8x4xf32, #tpu.memory_space<vmem>>, vector<8x4xf32>
      %50 = arith.addf %49, %39 : vector<8x4xf32>
      %c0_31 = arith.constant 0 : index
      %c0_32 = arith.constant 0 : index
      %51 = vector.load %arg10[%c0_31, %c0_32] : memref<8x4xf32, #tpu.memory_space<vmem>>, vector<8x4xf32>
      tpu.vector_store %arg10[%c0_31, %c0_32], %50 {strides = array<i32>} : memref<8x4xf32, #tpu.memory_space<vmem>>, vector<8x4xf32>,
    } else {
    }
    %c1_i32 = arith.constant 1 : i32
    %46 = arith.cmpi eq, %arg2, %c1_i32 : i32
    %47 = arith.extui %46 : i1 to i32
    %c0_i32_28 = arith.constant 0 : i32
    %48 = arith.cmpi ne, %47, %c0_i32_28 : i32
    scf.if %48 {
      %c0_29 = arith.constant 0 : index
      %c0_30 = arith.constant 0 : index
      %49 = vector.load %arg10[%c0_29, %c0_30] : memref<8x4xf32, #tpu.memory_space<vmem>>, vector<8x4xf32>
      %c0_31 = arith.constant 0 : index
      %c0_32 = arith.constant 0 : index
      %50 = vector.load %arg7[%c0_31, %c0_32] : memref<1x4xf32, #tpu.memory_space<vmem>>, vector<1x4xf32>
      %51 = vector.broadcast %50 : vector<1x4xf32> to vector<8x4xf32>
      %52 = arith.addf %49, %51 : vector<8x4xf32>
      %c0_33 = arith.constant 0 : index
      %c0_34 = arith.constant 0 : index
      %c0_35 = arith.constant 0 : index
      %53 = vector.load %arg8[%c0_33, %c0_34, %c0_35] : memref<1x8x4xf32, #tpu.memory_space<vmem>>, vector<1x8x4xf32>
      %54 = vector.shape_cast %53 : vector<1x8x4xf32> to vector<8x4xf32>
      %55 = vector.shape_cast %52 : vector<8x4xf32> to vector<1x8x4xf32>
      tpu.vector_store %arg8[%c0_33, %c0_34, %c0_35], %55 {strides = array<i32>} : memref<1x8x4xf32, #tpu.memory_space<vmem>>, vector<1x8x4xf32>,
    } else {
    }
    return
  }
  func.func @transform_0(%arg0: i32, %arg1: i32, %arg2: i32) -> (i32, i32, i32, i32) {
    %c0_i32 = arith.constant 0 : i32
    %c0_i32_0 = arith.constant 0 : i32
    return %arg0, %arg2, %arg1, %c0_i32 : i32, i32, i32, i32
  }
  func.func @transform_1(%arg0: i32, %arg1: i32, %arg2: i32) -> (i32, i32, i32, i32) {
    %c0_i32 = arith.constant 0 : i32
    %c0_i32_0 = arith.constant 0 : i32
    %c0_i32_1 = arith.constant 0 : i32
    return %arg0, %arg2, %c0_i32, %c0_i32_0 : i32, i32, i32, i32
  }
  func.func @transform_2(%arg0: i32, %arg1: i32, %arg2: i32) -> (i32, i32, i32, i32) {
    %c0_i32 = arith.constant 0 : i32
    %c0_i32_0 = arith.constant 0 : i32
    %c0_i32_1 = arith.constant 0 : i32
    return %arg0, %arg2, %c0_i32, %c0_i32_0 : i32, i32, i32, i32
  }
  func.func @transform_3(%arg0: i32, %arg1: i32, %arg2: i32) -> (i32, i32, i32) {
    %c0_i32 = arith.constant 0 : i32
    %c0_i32_0 = arith.constant 0 : i32
    %c0_i32_1 = arith.constant 0 : i32
    return %arg2, %c0_i32, %c0_i32_0 : i32, i32, i32
  }
  func.func @transform_4(%arg0: i32, %arg1: i32, %arg2: i32) -> (i32, i32) {
    %c0_i32 = arith.constant 0 : i32
    %c0_i32_0 = arith.constant 0 : i32
    %c0_i32_1 = arith.constant 0 : i32
    return %c0_i32, %c0_i32_0 : i32, i32
  }
  func.func @transform_5(%arg0: i32, %arg1: i32, %arg2: i32) -> (i32, i32, i32) {
    %c0_i32 = arith.constant 0 : i32
    %c0_i32_0 = arith.constant 0 : i32
    return %arg0, %arg1, %c0_i32 : i32, i32, i32
  }
  func.func @transform_6(%arg0: i32, %arg1: i32, %arg2: i32) -> (i32, i32, i32, i32) {
    %c0_i32 = arith.constant 0 : i32
    %c0_i32_0 = arith.constant 0 : i32
    return %arg0, %arg2, %arg1, %c0_i32 : i32, i32, i32, i32
  }
}

</mosaic_0001>

<bundles_post_ra>
// kernel: tpu_custom_call.1
= control target key start
LH: loop header
LB: loop body
LE: loop exit
PB: predicated region body
PF: predicated region fallthrough
CT: control target
= control target key end

     0   :  { %s1269_s0 = inlined_call_operand.vmem [shape: f32[2,2,8,16], index: 0, kind: input, shape index: {}]   ;;  %s1270_s1 = inlined_call_operand.hbm [shape: f32[2,2,8,16], index: 1, kind: input, shape index: {}]   ;;  %s1271_s2 = inlined_call_operand.hbm [shape: f32[2,2,8,16], index: 2, kind: input, shape index: {}]   ;;  %s1272_s3 = inlined_call_operand.vmem [shape: f32[2,16,4], index: 3, kind: input, shape index: {}]   ;;  %s1273_s4 = inlined_call_operand.vmem [shape: f32[1,4], index: 4, kind: input, shape index: {}]   ;;  %s1274_s5 = inlined_call_operand.vmem [shape: f32[2,8,4], index: 5, kind: output, shape index: {0}]   ;;  %s1275_s6 = inlined_call_operand.hbm [shape: f32[2,2,8,8], index: 6, kind: output, shape index: {1}]  }
   0x1   :  { %1280 = sst [smem:[#allocation16_spill]] %s1270_s1 }
   0x2   :  { %12 = vsyncpa [#allocation4], 0 }
   0x3   :  { %14 = vsyncpa [#allocation4 + $0x1], 0 }
   0x4   :  { %15 = vsyncpa [#allocation7], 0 }
   0x5   :  { %17 = vsyncpa [#allocation7 + $0x1], 0 }
   0x6   :  { %18 = vsyncpa [#allocation5], 0 }
   0x7   :  { %20 = vsyncpa [#allocation5 + $0x1], 0  ;;  %s1067_s21 = smov 0   ;;  %s1069_s22 = smov 0  }
   0x8   :  { %s1071_s23 = smov 0   ;;  %s1073_s24 = smov 0  }
   0x9   :  { %s1075_s25 = smov 0   ;;  %s1077_s26 = smov 0  }
   0xa   :  { %s1079_s27 = smov 0   ;;  %s1081_s28 = smov 0  }
   0xb LB: > { %1281 = sst [smem:[#allocation12_spill]] %s1002_s21  ;;  %s749_s29 = sadd.s32 4294967295, %s1030_s28   ;;  %s1030_s28 = sphi %s1081_s28, %s26_s28   ;;  %s1026_s27 = sphi %s1079_s27, %s1294_s27   ;;  %s1022_s26 = sphi %s1077_s26, %s1299_s26   ;;  %s1018_s25 = sphi %s1075_s25, %s1292_s25   ;;  %s1014_s24 = sphi %s1073_s24, %s1298_s24   ;;  %s1010_s23 = sphi %s1071_s23, %s1297_s23   ;;  %s1006_s22 = sphi %s1069_s22, %s1296_s22   ;;  %s1002_s21 = sphi %s1067_s21, %s1295_s21  }
   0xc   : > { %1282 = sst [smem:[#allocation13_spill]] %s1026_s27  ;;  %s750_s30 = sadd.s32 4294967294, %s1030_s28  }
   0xd   : > { %s38_s7 = sadd.s32 1, %s1022_s26  ;;  %s45_s8 = sadd.s32 1, %s1026_s27 }
   0xe   : > { %p39_p0 = scmp.ge.s32.totalorder %s38_s7, 2  ;;  %s84_s9 = sadd.s32 1, %s1010_s23 }
   0xf   : > { %p91_p1 = scmp.ne.s32.totalorder %s1010_s23, %s1006_s22  ;;  %p92_p2 = scmp.eq.s32.totalorder %s1030_s28, 0 }
  0x10   : > { %s1301_s7 = smov (%p39_p0, %s38_s7), 0  ;;  %s1303_s8 = smov (!%p39_p0, %s45_s8), %s1026_s27 }
  0x11   : > { %1283 = sst [smem:[#allocation14_spill]] %s1301_s7  ;;  %s80_s10 = ssub.s32 %s1022_s26, %s1301_s7 }
  0x12   : > { %p1120_p3 = por %p92_p2, %p91_p1  ;;  %p47_p4 = scmp.ge.s32.totalorder %s1303_s8, 2 }
  0x13   : > { %p97_p5 = scmp.ne.s32.totalorder %s1006_s22, %s1002_s21  ;;  %p98_p6 = scmp.eq.s32.totalorder %s749_s29, 0 }
  0x14   : > { %p228_p7 = scmp.eq.s32.totalorder %s749_s29, 3  ;;  %s1305_s8 = smov (%p47_p4, %s1303_s8), 0 }
  0x15   : > { %1285 = sst [smem:[#allocation15_spill]] %s1305_s8  ;;  %p1128_p8 = por %p98_p6, %p97_p5 }
  0x16   : > { %p1132_p9 = por %p228_p7, %p91_p1  ;;  %s79_s14 = ssub.s32 %s1026_s27, %s1305_s8 }
  0x17   : > { %p234_p10 = scmp.eq.s32.totalorder %s750_s30, 3  ;;  %s81_s15 = sor.u32 %s80_s10, %s79_s14 }
  0x18   : > { %p82_p11 = scmp.eq.s32.totalorder %s81_s15, 0  ;;  %p797_p13 = scmp.lt.s32.totalorder %s1030_s28, 4 }
  0x19   : > { %p1138_p12 = por %p234_p10, %p97_p5  ;;  %s271_s17 = sand.u32 1, %s1010_s23  }
  0x1a   : > { %s1145_s18 = scalar_select %p82_p11, %s1010_s23, %s84_s9  }
  0x1b   : > { %s753_s19 = sshll.u32 %s271_s17, 3  ;;  %s754_s20 = sshll.u32 %s1026_s27, 1 }
  0x1c   : > { %s279_s29 = sadd.s32 %s1022_s26, %s754_s20  ;;  %s275_s7 = scalar_lea.vmem [#allocation3], %s753_s19 }
  0x1d   : > { %s285_s21 = sshll.u32 %s275_s7, 4  ;;  %s755_s8 = sshll.u32 %s279_s29, 3  ;;  %s286_s21 = int_to_ptr.vmem [resolvable:$true] %s285_s21 }
  0x1e   : > { %s1289_s1 = sld [smem:[#allocation16_spill]]  ;;  %p1154_p0 = pnand %p797_p13, %p1120_p3 }
  0x1f   : > { %p759_p1 = scmp.ge.s32.totalorder %s1030_s28, 1  ;;  %s272_s27 = scalar_lea.sflag [#allocation4], %s271_s17 }
  0x20   : > { %p319_p2 = scmp.lt.s32.totalorder %s1030_s28, 5  ;;  %s302_s29 = scalar_lea.hbm %s1271_s2, %s755_s8 }
  0x21   : > { %s304_s30 = sshll.u32 %s302_s29, 4  ;;  %s296_s11 = scalar_lea.vmem [#allocation6], %s753_s19  ;;  %s305_s30 = int_to_ptr.hbm [resolvable:$true] %s304_s30 }
  0x22   : > { %p320_p4 = pnand %p759_p1, %p319_p2  ;;  %s306_s10 = sshll.u32 %s296_s11, 4  ;;  %s307_s10 = int_to_ptr.vmem [resolvable:$true] %s306_s10 }
  0x24   : > { %s281_s14 = scalar_lea.hbm %s1289_s1, %s755_s8  ;;  %s293_s1 = scalar_lea.sflag [#allocation7], %s271_s17 }
  0x25   : > { %s283_s9 = sshll.u32 %s281_s14, 4  ;;  %323 = sbr.rel (%p320_p4) target bundleno = 742 (0x2e6), region = 40  ;;  %s284_s9 = int_to_ptr.hbm [resolvable:$true] %s283_s9 }
  0x26   : > { %789 = dma.hbm_to_vmem [thread:$0]  (!%p1154_p0), %s284_s9, 128, %s286_s21, %s272_s27  }
  0x27   : > { %792 = dma.hbm_to_vmem [thread:$0]  (!%p1154_p0), %s305_s30, 128, %s307_s10, %s293_s1  }
  0x28   : > { %s1168_s14 = sand.u32 (!%p320_p4), 1, %s1006_s22  }
  0x29   : > { %s1171_s21 = sshll.u32 (!%p320_p4), %s1168_s14, 3  ;;  %s326_s27 = scalar_lea.sflag (!%p320_p4), [#allocation4], %s1168_s14 }
  0x2a   : > { %s329_s8 = scalar_lea.vmem [#allocation3], %s1171_s21 }
  0x2b   : > { %989 = dma.done.wait (%p1128_p8), %s326_s27, 128  }
  0x2c   : > { %991 = vsyncadd (%p1128_p8), %s326_s27, 4294967168  ;;  %s336_s1 = scalar_lea.sflag [#allocation7], %s1168_s14  ;;  %s339_s17 = scalar_lea.vmem [#allocation6], %s1171_s21 }
  0x2d   : > { %993 = dma.done.wait (%p1128_p8), %s336_s1, 128  }
  0x2e   : > { %995 = vsyncadd (%p1128_p8), %s336_s1, 4294967168  ;;  %p397_p3 = scmp.lt.s32.totalorder %s1018_s25, 1  ;;  %p399_p5 = scmp.lt.s32.totalorder %s1014_s24, 1  ;;  %v424_v0 = vld [vmem:[%s329_s8] sm:$0xff]  ;;  %vm428_vm0 = vcmask 130048   ;;  %v449_v6 = vlaneseq  ;;  %vm457_vm2 = vcmask 64512  }
  0x2f   : > { %v425_v1 = vpack.c.bf16 %v424_v0, %v424_v0  ;;  %v426_v18 = vld [vmem:[%s339_s17] sm:$0xff]  ;;  %vm474_vm3 = vcmask 1043456   ;;  %p771_p6 = scmp.ne.s32.totalorder %s1014_s24, 0 }
  0x30   : > { %s398_s19 = scalar_select %p397_p3, %s1018_s25, 1  ;;  %v450_v7 = vshrl.u32 %v449_v6, 7  ;;  %v454_v8 = vand.u32 127, %v449_v6  ;;  %v427_v19 = vpack.c.bf16 %v426_v18, %v426_v18 }
  0x31   : > { %s1189_s15 = scalar_select %p399_p5, %s1014_s24, 1  ;;  %v433_v3 = vsel %vm428_vm0, %v425_v1, 0 }
  0x32   : > { %s763_s9 = sshll.u32 %s398_s19, 1  ;;  %s767_s7 = sshll.u32 %s398_s19, 3  ;;  %442 = vmatpush.bf16.xpose.msra.mxu0 %v433_v3  ;;  %vm455_vm1 = vcmp.le.s32.totalorder %v454_v8, %v450_v7  ;;  %v476_v20 = vsel %vm474_vm3, %v427_v19, 0 }
  0x33   : > { %s405_s20 = sadd.s32 %s763_s9, %s1189_s15  ;;  %s1195_s11 = scalar_lea.vmem %s1274_s5, %s767_s7  ;;  %485 = vmatpush.bf16.msra.mxu1 %v476_v20 }
  0x34   : > { %s764_s12 = sshll.u32 %s405_s20, 3  ;;  %s779_s8 = sshll.u32 %s1189_s15, 4 }
  0x35   : > { %s407_s1 = scalar_lea.vmem %s1269_s0, %s764_s12  ;;  %s412_s7 = scalar_lea.vmem %s1272_s3, %s779_s8 }
  0x36   : > { %v421_v2 = vld [vmem:[%s407_s1] sm:$0xff]  ;;  %v492_v21 = vld [vmem:[%s412_s7 + $0x8] sm:$0xff]  ;;  %s396_s20 = scalar_lea.vmem [#allocation8], %s1171_s21 }
  0x37   : > { %v422_v4 = vmul.f32 0.25, %v421_v2  ;;  %510 = vmatpush.msra.mxu2 %v492_v21  ;;  %v491_v26 = vld [vmem:[%s412_s7] sm:$0xff] }
  0x39   : > { %v423_v5 = vpack.c.bf16 %v422_v4, %v422_v4  ;;  %511 = vmatpush.msra.mxu2 %v491_v26 }
  0x3b   : > { %768 = vmatmul.msk.bf16.vlgmr.msra.gmra.mxu0 %vm428_vm0, %v423_v5 }
  0xb8   : > { %v444_v9 = vpop.f32.mrf.mxu0 }
  0xb9   : > { %v456_v10 = vsel %vm455_vm1, %v444_v9, -inf }
  0xba   : > { %v458_v11 = vsel %vm457_vm2, %v456_v10, -inf }
  0xbb   : > { %459 = vmax.xlane.f32.xlu0 %v458_v11 }
  0xc0   : > { %v446_v12 = vpop.f32.mrf.mxu0 }
 0x12e   : > { %v460_v13 = vpop.xlane.xlu0 %459 }
 0x12f   : > { %v461_v14 = vsub.f32 %v456_v10, %v460_v13 }
 0x131   : > { %v462_v15 = vmul.f32 1.442695, %v461_v14 }
 0x133   : > { %863 = vpow2.f32 %v462_v15 }
 0x139   : > { %v864_v16 = vpop.eup %863 }
 0x13a   : > { %v464_v17 = vsel %vm457_vm2, %v864_v16, 0.0 }
 0x13b   : > { %465 = vadd.xlane.f32.xlu0 %v464_v17 }
 0x1ae   : > { %v466_v22 = vpop.xlane.xlu0 %465 }
 0x1af   : > { %865 = vrcp.f32 %v466_v22 }
 0x1b5   : > { %v866_v23 = vpop.eup %865 }
 0x1b6   : > { %v468_v24 = vmul.f32 %v866_v23, %v864_v16 }
 0x1b8   : > { %469 = vst.msk [vmem:[%s396_s20] sm:$0xff] %vm457_vm2, %v468_v24  ;;  %v470_v25 = vpack.c.bf16 %v468_v24, %v468_v24 }
 0x1ba   : > { %769 = vmatmul.msk.bf16.vlgmr.msra.gmra.mxu1 %vm457_vm2, %v470_v25 }
 0x237   : > { %v487_v27 = vpop.f32.mrf.mxu1 }
 0x238   : > { %770 = vmatmul.msk.f32.vlgmr.msra.gmra.mxu2 %vm428_vm0, %v487_v27 }
 0x23f   : > { %v489_v28 = vpop.f32.mrf.mxu1 }
 0x2b7   : > { %519 = sbr.rel (%p771_p6) target bundleno = 702 (0x2be), region = 52 }
 0x2bb   : > { %v513_v29 = vpop.f32.mrf.mxu2 }
 0x2bc   : > { %vm520_vm4 = vcmask 31744  }
 0x2bd   : > { %521 = vst.msk [vmem:[#allocation2] sm:$0xff] %vm520_vm4, %v513_v29 }
 0x2be PF: > { %p772_p7 = scmp.le.s32.totalorder %s1014_s24, 0 }
 0x2c0   : > { %525 = sbr.rel (%p772_p7) target bundleno = 713 (0x2c9), region = 56 }
 0x2c5   : > { %v526_v30 = vld [vmem:[#allocation2] sm:$0xff]  ;;  %vm528_vm5 = vcmask 31744  }
 0x2c6   : > { %v527_v31 = vadd.f32 %v526_v30, %v513_v29 }
 0x2c8   : > { %529 = vst.msk [vmem:[#allocation2] sm:$0xff] %vm528_vm5, %v527_v31 }
 0x2c9 PF: > { %p773_p8 = scmp.ne.s32.totalorder %s1014_s24, 1 }
 0x2cb   : > { %533 = sbr.rel (%p773_p8) target bundleno = 725 (0x2d5), region = 60 }
 0x2d0   : > { %v534_v32 = vld [vmem:[#allocation2] sm:$0xff]  ;;  %vm540_vm6 = vcmask 31744  }
 0x2d1   : > { %v867_v33 = vld [vmem:[%s1273_s4] ss:$0 sm:$0xff] }
 0x2d2   : > { %v539_v34 = vadd.f32 %v867_v33, %v534_v32 }
 0x2d4   : > { %541 = vst.msk [vmem:[%s1195_s11] sm:$0xff] %vm540_vm6, %v539_v34 }
 0x2d5 PF: > { %s775_s29 = sshll.u32 %s1018_s25, 1  ;;  %s568_s12 = sshll.u32 %s396_s20, 4  ;;  %s569_s12 = int_to_ptr.vmem [resolvable:$true] %s568_s12 }
 0x2d6   : > { %s564_s30 = sadd.s32 %s1014_s24, %s775_s29  ;;  %s550_s9 = scalar_lea.sflag [#allocation5], %s1168_s14 }
 0x2d7   : > { %s776_s10 = sshll.u32 %s564_s30, 3  ;;  %s948_s21 = scalar_lea.hbm %s1275_s6, 32 }
 0x2d8   : > { %s566_s8 = scalar_lea.hbm %s1275_s6, %s776_s10 }
 0x2d9   : > { %s570_s19 = sshll.u32 %s566_s8, 4  ;;  %s571_s19 = int_to_ptr.hbm [resolvable:$true] %s570_s19 }
 0x2da   : > { %s942_s11 = sshra.s32 %s571_s19, 4  ;;  %s943_s11 = int_to_ptr.hbm [resolvable:$true] %s942_s11 }
 0x2db   : > { %s944_s7 = scalar_lea.hbm %s943_s11, 8  ;;  %p949_p0 = scmp.lt.s32.totalorder %s943_s11, %s1275_s6 }
 0x2dc   : > { %p945_p10 = scmp.ne.s32.totalorder %s943_s11, %s944_s7  ;;  %p950_p1 = scmp.lt.s32.totalorder %s948_s21, %s944_s7 }
 0x2de   : > { %p946_p11 = pnand %p945_p10, %p1132_p9  ;;  %p951_p2 = por %p950_p1, %p949_p0 }
 0x2e0   : > { %p947_p13 = pneg %p946_p11 }
 0x2e2   : > { %p952_p4 = pnand %p951_p2, %p947_p13 }
 0x2e4   : > { %955 = shalt.err (!%p952_p4)
}
 0x2e5   : > { %784 = dma.vmem_to_hbm [thread:$0]  (%p1132_p9), %s569_s12, 128, %s571_s19, %s550_s9  }
 0x2e6 PF: > { %s1291_s14 = sld [smem:[#allocation12_spill]]  ;;  %p798_p3 = scmp.ge.s32.totalorder %s1030_s28, 2 }
 0x2e8   : > { %p794_p5 = pnand %p798_p3, %p1138_p12 }
 0x2ea   : > { %p795_p6 = pneg %p794_p5 }
 0x2ec   : > { %s592_s15 = sand.u32 1, %s1291_s14  }
 0x2ed   : > { %s593_s29 = scalar_lea.sflag [#allocation5], %s592_s15 }
 0x2ee   : > { %997 = dma.done.wait (%p795_p6), %s593_s29, 128  }
 0x2ef   : > { %999 = vsyncadd (%p795_p6), %s593_s29, 4294967168  ;;  %s26_s28 = sadd.s32 1, %s1030_s28   ;;  %s1292_s25 = sld [smem:[#allocation13_spill]] }
 0x2f0   : > { %p23_p7 = scmp.ge.s32.totalorder %s26_s28, 6   ;;  %s1293_s13 = sld [smem:[#allocation14_spill]] }
 0x2f1   : > { %s1294_s27 = sld [smem:[#allocation15_spill]]  ;;  %s1295_s21 = smov %s1006_s22 }
 0x2f2   : > { %s1296_s22 = smov %s1010_s23  ;;  %s1297_s23 = smov %s1145_s18 }
 0x2f3   : > { %s1298_s24 = smov %s1022_s26  ;;  %25 = sbr.rel (!%p23_p7) target bundleno = 11 (0xb), region = 128 }
 0x2f6   : > { %s1299_s26 = smov %s1293_s13 }
 0x2f8   :  { %599 = vsyncpa [#allocation4], 1 }
 0x2f9   :  { %601 = vsyncpa [#allocation4 + $0x1], 1 }
 0x2fa   :  { %602 = vsyncpa [#allocation7], 1 }
 0x2fb   :  { %604 = vsyncpa [#allocation7 + $0x1], 1 }
 0x2fc   :  { %605 = vsyncpa [#allocation5], 1 }
 0x2fd   :  { %607 = vsyncpa [#allocation5 + $0x1], 1 }

</bundles_post_ra>
